<compile_context>
chip_gen: v6e
topology: v6e:2x2x1
jax: 0.10.0
libtpu: 0.0.40
codegen_flags: <defaults>
</compile_context>

<pallas_src>
import warnings

import jax
import jax.numpy as jnp
from jax.experimental import pallas as pl
from jax.experimental.pallas import tpu as pltpu


def _round_up(x, m):
    return ((x + m - 1) // m) * m


def _make_patch_embed_kernel(compute_dtype):
    def kernel(x_ref, w_ref, b_ref, o_ref):
        # x_ref: (tm, K)  w_ref: (K, N)  b_ref: (1, N)  o_ref: (tm, N)
        x = x_ref[...]
        w = w_ref[...]
        if compute_dtype is not None:
            # bf16 MXU operands on v6e/v7x; accumulation stays f32.
            x = x.astype(compute_dtype)
            w = w.astype(compute_dtype)
        acc = jnp.dot(x, w, preferred_element_type=jnp.float32)
        acc = acc + b_ref[...].astype(jnp.float32)
        o_ref[...] = acc.astype(o_ref.dtype)

    return kernel


def _working_set_bytes(tm, K, N, x_dtype, w_dtype, out_dtype):
    """Conservative double-buffered VMEM working-set estimate for one grid step."""
    x_item = jnp.dtype(x_dtype).itemsize
    w_item = jnp.dtype(w_dtype).itemsize
    o_item = jnp.dtype(out_dtype).itemsize
    # x block + out block (double-buffered) and w + b (budget two copies to be safe).
    return 2 * (tm * K * x_item + tm * N * o_item + K * N * w_item + N * w_item)


# Lowest scoped-VMEM default across generations (v5e) and a budget that also fits
# v7x's 64 MiB physical VMEM with headroom.
_DEFAULT_SCOPED_VMEM = 16 * 1024 * 1024
_VMEM_BUDGET = 40 * 1024 * 1024


def patch_embed(latent, w, b, *, tm=512, compute_dtype=None, out_dtype=None,
                vmem_limit_bytes=None):
    """PatchEmbed forward: latent @ w + b on the last axis.

    latent: (..., K) with K = in_channels * patch_size**2
    w:      (K, N)   (PyTorch nn.Linear weight transposed)
    b:      (N,)
    """
    *lead, K = latent.shape
    Kw, N = w.shape
    assert K == Kw, (K, Kw)
    out_dtype = out_dtype or latent.dtype

    if N % 128 != 0:
        # Perf only (not correctness): non-lane-dense out_channels pays masked stores.
        warnings.warn("PatchEmbed out_channels is not a multiple of 128; "
                      "output stores will be masked (slower).")

    x = latent.reshape(-1, K)
    M = x.shape[0]

    # M tile: multiple of 8 (sublane), capped at the (8-padded) problem size,
    # then shrunk until the double-buffered working set fits the VMEM budget.
    tm_eff = min(tm, _round_up(M, 8))
    tm_eff = max(8, (tm_eff // 8) * 8)
    while (tm_eff > 8 and
           _working_set_bytes(tm_eff, K, N, x.dtype, w.dtype, out_dtype) > _VMEM_BUDGET):
        tm_eff = max(8, (tm_eff // 2 // 8) * 8)

    ws = _working_set_bytes(tm_eff, K, N, x.dtype, w.dtype, out_dtype)
    if vmem_limit_bytes is None and ws > _DEFAULT_SCOPED_VMEM:
        # Raise the scoped-VMEM limit just enough; stays well under v7x's 64 MiB.
        vmem_limit_bytes = min(ws + 4 * 1024 * 1024, 48 * 1024 * 1024)

    grid = (pl.cdiv(M, tm_eff),)  # ragged last tile handled by Pallas (no pad/slice)
    b2d = b.reshape(1, N)

    cost = pl.CostEstimate(
        flops=2 * M * K * N,
        transcendentals=0,
        bytes_accessed=(M * K * jnp.dtype(x.dtype).itemsize
                        + K * N * jnp.dtype(w.dtype).itemsize
                        + N * jnp.dtype(b.dtype).itemsize
                        + M * N * jnp.dtype(out_dtype).itemsize),
    )

    out = pl.pallas_call(
        _make_patch_embed_kernel(compute_dtype),
        out_shape=jax.ShapeDtypeStruct((M, N), out_dtype),
        grid_spec=pltpu.PrefetchScalarGridSpec(
            num_scalar_prefetch=0,
            grid=grid,
            in_specs=[
                pl.BlockSpec((tm_eff, K), lambda i: (i, 0)),   # activations (M-tiled)
                pl.BlockSpec((K, N), lambda i: (0, 0)),        # full weight, VMEM-resident
                pl.BlockSpec((1, N), lambda i: (0, 0)),        # full bias, VMEM-resident
            ],
            out_specs=pl.BlockSpec((tm_eff, N), lambda i: (i, 0)),
        ),
        compiler_params=pltpu.CompilerParams(
            dimension_semantics=("parallel",),
            vmem_limit_bytes=vmem_limit_bytes,
        ),
        cost_estimate=cost,
    )(x, w, b2d)

    return out.reshape(*lead, N)


def _reference(latent, w, b):
    # Pure-JAX reference mirroring PyTorch: latent @ W^T + b, with w = W^T here.
    x = latent.astype(jnp.float32)
    return jnp.dot(x, w.astype(jnp.float32),
                   precision=jax.lax.Precision.HIGHEST) + b.astype(jnp.float32)


if __name__ == "__main__":
    patch_size = 2
    in_channels = 4
    in_features = in_channels * patch_size * patch_size    # 16
    out_channels = 256                                      # lane-dense (multiple of 128)
    batch, seq = 2, 32                                      # seq = number of patches

    key = jax.random.PRNGKey(0)
    k_x, k_w, k_b = jax.random.split(key, 3)

    latent = jax.random.normal(k_x, (batch, seq, in_features), jnp.float32)
    w = jax.random.normal(k_w, (in_features, out_channels), jnp.float32) * 0.02
    b = jax.random.normal(k_b, (out_channels,), jnp.float32) * 0.02

    ref = _reference(latent, w, b)

    # f32 path (tight tolerance).
    out = patch_embed(latent, w, b)
    out = jax.block_until_ready(out)
    assert out.shape == (batch, seq, out_channels), out.shape
    assert jnp.allclose(out, ref, atol=1e-3, rtol=1e-3), (
        "f32 mismatch vs reference, max abs err = %e"
        % float(jnp.max(jnp.abs(out - ref)))
    )

    # bf16-operand path (MXU-friendly on v6e/v7x); looser tolerance for bf16 rounding.
    out_bf16 = patch_embed(latent, w, b, compute_dtype=jnp.bfloat16)
    out_bf16 = jax.block_until_ready(out_bf16)
    assert jnp.allclose(out_bf16, ref, atol=1e-2, rtol=1e-2), (
        "bf16 mismatch vs reference, max abs err = %e"
        % float(jnp.max(jnp.abs(out_bf16 - ref)))
    )

    print("KERNEL_OK")
</pallas_src>

<mosaic_0001>
module attributes {stable_mosaic.version = 11 : i64} {
  func.func @kernel(%arg0: i32, %arg1: memref<64x16xf32, #tpu.memory_space<vmem>>, %arg2: memref<16x256xf32, #tpu.memory_space<vmem>>, %arg3: memref<1x256xf32, #tpu.memory_space<vmem>>, %arg4: memref<64x256xf32, #tpu.memory_space<vmem>>) attributes {dimension_semantics = [#tpu.dimension_semantics<parallel>], iteration_bounds = array<i64: 1>, scalar_prefetch = 0 : i64, scratch_operands = 0 : i64, tpu.core_type = #tpu.core_type<tc>, window_params = [{transform_indices = @transform_0, window_bounds = array<i64: 64, 16>}, {pipeline_mode = #tpu.pipeline_mode<synchronous>, transform_indices = @transform_1, window_bounds = array<i64: 16, 256>}, {pipeline_mode = #tpu.pipeline_mode<synchronous>, transform_indices = @transform_2, window_bounds = array<i64: 1, 256>}, {transform_indices = @transform_3, window_bounds = array<i64: 64, 256>}]} {
    %c0 = arith.constant 0 : index
    %c0_0 = arith.constant 0 : index
    %0 = vector.load %arg1[%c0, %c0_0] : memref<64x16xf32, #tpu.memory_space<vmem>>, vector<64x16xf32>
    %c0_1 = arith.constant 0 : index
    %c0_2 = arith.constant 0 : index
    %1 = vector.load %arg2[%c0_1, %c0_2] : memref<16x256xf32, #tpu.memory_space<vmem>>, vector<16x256xf32>
    %cst = arith.constant dense<0.000000e+00> : vector<64x256xf32>
    %2 = tpu.matmul %0, %1, %cst {dimension_numbers = #tpu.dot_dimension_numbers<[1], [0], [0], [1], [0, 0, 1, 1], [], []>} : vector<64x16xf32>, vector<16x256xf32>, vector<64x256xf32> -> vector<64x256xf32>
    %c0_3 = arith.constant 0 : index
    %c0_4 = arith.constant 0 : index
    %3 = vector.load %arg3[%c0_3, %c0_4] : memref<1x256xf32, #tpu.memory_space<vmem>>, vector<1x256xf32>
    %4 = vector.broadcast %3 : vector<1x256xf32> to vector<64x256xf32>
    %5 = arith.addf %2, %4 : vector<64x256xf32>
    %c0_5 = arith.constant 0 : index
    %c0_6 = arith.constant 0 : index
    %6 = vector.load %arg4[%c0_5, %c0_6] : memref<64x256xf32, #tpu.memory_space<vmem>>, vector<64x256xf32>
    tpu.vector_store %arg4[%c0_5, %c0_6], %5 {strides = array<i32>} : memref<64x256xf32, #tpu.memory_space<vmem>>, vector<64x256xf32>,
    return
  }
  func.func @transform_0(%arg0: i32) -> (i32, i32) {
    %c0_i32 = arith.constant 0 : i32
    %c0_i32_0 = arith.constant 0 : i32
    return %arg0, %c0_i32 : i32, i32
  }
  func.func @transform_1(%arg0: i32) -> (i32, i32) {
    %c0_i32 = arith.constant 0 : i32
    %c0_i32_0 = arith.constant 0 : i32
    %c0_i32_1 = arith.constant 0 : i32
    return %c0_i32, %c0_i32_0 : i32, i32
  }
  func.func @transform_2(%arg0: i32) -> (i32, i32) {
    %c0_i32 = arith.constant 0 : i32
    %c0_i32_0 = arith.constant 0 : i32
    %c0_i32_1 = arith.constant 0 : i32
    return %c0_i32, %c0_i32_0 : i32, i32
  }
  func.func @transform_3(%arg0: i32) -> (i32, i32) {
    %c0_i32 = arith.constant 0 : i32
    %c0_i32_0 = arith.constant 0 : i32
    return %arg0, %c0_i32 : i32, i32
  }
}

</mosaic_0001>

<bundles_post_ra>
// kernel: tpu_custom_call.1
= control target key start
LH: loop header
LB: loop body
LE: loop exit
PB: predicated region body
PF: predicated region fallthrough
CT: control target
= control target key end

     0   :  { %vm39_vm0 = vcmask 130048   ;;  %s321_s0 = inlined_call_operand.vmem [shape: f32[64,16], index: 0, kind: input, shape index: {}]   ;;  %s322_s1 = inlined_call_operand.vmem [shape: f32[16,256], index: 1, kind: input, shape index: {}]   ;;  %s323_s2 = inlined_call_operand.vmem [shape: f32[1,256], index: 2, kind: input, shape index: {}]   ;;  %s324_s3 = inlined_call_operand.hbm [shape: f32[64,256], index: 3, kind: output, shape index: {}]  }
   0x1   :  { %v26_v0 = vld [vmem:[%s322_s1 + $0x18] sm:$0xff]  ;;  %v25_v1 = vld [vmem:[%s322_s1 + $0x10] sm:$0xff]  ;;  %v24_v2 = vld [vmem:[%s322_s1 + $0x8] sm:$0xff] }
   0x2   :  { %92 = vmatprep.subr.mxu0 %v26_v0  ;;  %217 = vmatprep.subr.mxu1 %v26_v0  ;;  %v23_v3 = vld [vmem:[%s322_s1] sm:$0xff] }
   0x3   :  { %93 = vmatpush1.msra.mxu0 %v25_v1  ;;  %219 = vmatpush1.msra.mxu1 %v25_v1  ;;  %v15_v4 = vld [vmem:[%s321_s0] sm:$0xff] }
   0x4   :  { %94 = vmatprep.subr.mxu0 %v24_v2  ;;  %218 = vmatprep.subr.mxu1 %v24_v2  ;;  %v19_v5 = vld [vmem:[%s321_s0 + $0x20] sm:$0xff] }
   0x5   :  { %95 = vmatpush1.msra.mxu0 %v23_v3  ;;  %220 = vmatpush1.msra.mxu1 %v23_v3 }
   0x6   :  { %8 = vsyncpa [#allocation3], 0  ;;  %v247_v6 = vmov 0.0   ;;  %v16_v7 = vld [vmem:[%s321_s0 + $0x8] sm:$0xff]  ;;  %v17_v9 = vld [vmem:[%s321_s0 + $0x10] sm:$0xff]  ;;  %v29_v13 = vlaneseq }
   0x7   :  { %128 = vmatprep.mubr.f32.mxu0 %v247_v6  ;;  %152 = vmatprep.mubr.f32.mxu1 %v247_v6  ;;  %v20_v8 = vld [vmem:[%s321_s0 + $0x28] sm:$0xff]  ;;  %v21_v10 = vld [vmem:[%s321_s0 + $0x30] sm:$0xff]  ;;  %v18_v11 = vld [vmem:[%s321_s0 + $0x18] sm:$0xff] }
   0x8   :  { %209 = vmatmul.mubr.msk.f32.vlgmr.msra.gmra.mxu0 %vm39_vm0, %v15_v4  ;;  %213 = vmatmul.mubr.msk.f32.vlgmr.msra.gmra.mxu1 %vm39_vm0, %v19_v5  ;;  %v22_v12 = vld [vmem:[%s321_s0 + $0x38] sm:$0xff]  ;;  %v30_v14 = vshrl.u32 %v29_v13, 7  ;;  %v27_v16 = vld [vmem:[%s323_s2] sm:$0x3]  ;;  %s248_s0 = smov [#allocation2]  }
   0x9   :  { %134 = vmatprep.mubr.f32.mxu0 %v247_v6  ;;  %158 = vmatprep.mubr.f32.mxu1 %v247_v6  ;;  %s198_s2 = sshll.u32 %s248_s0, 4  ;;  %s199_s2 = int_to_ptr.vmem [resolvable:$true] %s198_s2 }
   0xa   :  { %v31_v15 = vsub.s32 0, %v30_v14  ;;  %v35_v17 = vsub.s32 1, %v30_v14  ;;  %s225_s10 = scalar_lea.vmem %s199_s2, 2048  ;;  %p230_p1 = scmp.lt.s32.totalorder %s199_s2, %s199_s2 }
   0xb   :  { %p226_p0 = scmp.ne.s32.totalorder %s199_s2, %s225_s10  ;;  %p231_p2 = scmp.lt.s32.totalorder %s225_s10, %s225_s10 }
   0xc   :  { %210 = vmatmul.mubr.msk.f32.gmra.mxu0 %vm39_vm0, %v16_v7  ;;  %214 = vmatmul.mubr.msk.f32.gmra.mxu1 %vm39_vm0, %v20_v8  ;;  %v32_v18 = vrot.slane %v27_v16, %v31_v15  ;;  %v36_v19 = vrot.slane %v27_v16, %v35_v17 }
   0xd   :  { %140 = vmatprep.mubr.f32.mxu0 %v247_v6  ;;  %164 = vmatprep.mubr.f32.mxu1 %v247_v6  ;;  %p232_p3 = por %p231_p2, %p230_p1 }
   0xf   :  { %p233_p4 = pnand %p232_p3, %p226_p0 }
  0x10   :  { %211 = vmatmul.mubr.msk.f32.gmra.mxu0 %vm39_vm0, %v17_v9  ;;  %215 = vmatmul.mubr.msk.f32.gmra.mxu1 %vm39_vm0, %v21_v10 }
  0x11   :  { %146 = vmatprep.mubr.f32.mxu0 %v247_v6  ;;  %170 = vmatprep.mubr.f32.mxu1 %v247_v6 }
  0x14   :  { %212 = vmatmul.mubr.msk.f32.gmra.mxu0 %vm39_vm0, %v18_v11  ;;  %216 = vmatmul.mubr.msk.f32.gmra.mxu1 %vm39_vm0, %v22_v12 }
  0xc8   :  { %v130_v20 = vpop.f32.mrf.mxu0  ;;  %v154_v21 = vpop.f32.mrf.mxu1 }
  0xc9   :  { %v131_v22 = vadd.f32 %v130_v20, %v32_v18  ;;  %v155_v23 = vadd.f32 %v154_v21, %v32_v18 }
  0xca   :  { %v132_v24 = vpop.f32.mrf.mxu0  ;;  %v156_v25 = vpop.f32.mrf.mxu1 }
  0xcb   :  { %177 = vst [vmem:[#allocation2] sm:$0xff] %v131_v22  ;;  %185 = vst [vmem:[#allocation2 + $0x40] sm:$0xff] %v155_v23  ;;  %v133_v26 = vadd.f32 %v132_v24, %v36_v19  ;;  %v157_v27 = vadd.f32 %v156_v25, %v36_v19 }
  0xcc   :  { %v136_v28 = vpop.f32.mrf.mxu0  ;;  %v160_v29 = vpop.f32.mrf.mxu1 }
  0xcd   :  { %178 = vst [vmem:[#allocation2 + $0x8] sm:$0xff] %v133_v26  ;;  %186 = vst [vmem:[#allocation2 + $0x48] sm:$0xff] %v157_v27  ;;  %v137_v30 = vadd.f32 %v136_v28, %v32_v18  ;;  %v161_v31 = vadd.f32 %v160_v29, %v32_v18 }
  0xce   :  { %v138_v32 = vpop.f32.mrf.mxu0  ;;  %v162_v33 = vpop.f32.mrf.mxu1 }
  0xcf   :  { %179 = vst [vmem:[#allocation2 + $0x10] sm:$0xff] %v137_v30  ;;  %187 = vst [vmem:[#allocation2 + $0x50] sm:$0xff] %v161_v31  ;;  %v139_v34 = vadd.f32 %v138_v32, %v36_v19  ;;  %v163_v35 = vadd.f32 %v162_v33, %v36_v19 }
  0xd0   :  { %v142_v36 = vpop.f32.mrf.mxu0  ;;  %v166_v37 = vpop.f32.mrf.mxu1 }
  0xd1   :  { %180 = vst [vmem:[#allocation2 + $0x18] sm:$0xff] %v139_v34  ;;  %188 = vst [vmem:[#allocation2 + $0x58] sm:$0xff] %v163_v35  ;;  %v143_v38 = vadd.f32 %v142_v36, %v32_v18  ;;  %v167_v39 = vadd.f32 %v166_v37, %v32_v18 }
  0xd2   :  { %v144_v40 = vpop.f32.mrf.mxu0  ;;  %v168_v41 = vpop.f32.mrf.mxu1 }
  0xd3   :  { %181 = vst [vmem:[#allocation2 + $0x20] sm:$0xff] %v143_v38  ;;  %189 = vst [vmem:[#allocation2 + $0x60] sm:$0xff] %v167_v39  ;;  %v145_v42 = vadd.f32 %v144_v40, %v36_v19  ;;  %v169_v43 = vadd.f32 %v168_v41, %v36_v19 }
  0xd4   :  { %v148_v44 = vpop.f32.mrf.mxu0  ;;  %v172_v45 = vpop.f32.mrf.mxu1 }
  0xd5   :  { %182 = vst [vmem:[#allocation2 + $0x28] sm:$0xff] %v145_v42  ;;  %190 = vst [vmem:[#allocation2 + $0x68] sm:$0xff] %v169_v43  ;;  %v149_v46 = vadd.f32 %v148_v44, %v32_v18  ;;  %v173_v47 = vadd.f32 %v172_v45, %v32_v18 }
  0xd6   :  { %v150_v48 = vpop.f32.mrf.mxu0  ;;  %v174_v49 = vpop.f32.mrf.mxu1 }
  0xd7   :  { %183 = vst [vmem:[#allocation2 + $0x30] sm:$0xff] %v149_v46  ;;  %191 = vst [vmem:[#allocation2 + $0x70] sm:$0xff] %v173_v47  ;;  %v151_v50 = vadd.f32 %v150_v48, %v36_v19  ;;  %v175_v51 = vadd.f32 %v174_v49, %v36_v19 }
  0xd9   :  { %184 = vst [vmem:[#allocation2 + $0x38] sm:$0xff] %v151_v50  ;;  %192 = vst [vmem:[#allocation2 + $0x78] sm:$0xff] %v175_v51 }
  0xda   :  { %236 = shalt.err (!%p233_p4)
}
  0xdb   :  { %s249_s11 = smov 256   ;;  %s250_s12 = smov 16  }
  0xdc   :  { %204 = dma.vmem_to_hbm [thread:$0]  %s199_s2, 2048, %s324_s3, [#allocation3], %s249_s11, %s249_s11, %s250_s12  }
  0xdd   :  { %245 = dma.done.wait [#allocation3], 2048  }
  0xde   :  { %246 = vsyncadd [#allocation3], 4294965248 }
  0xdf   :  { %208 = vsyncpa [#allocation3], 1 }

</bundles_post_ra>
